<compile_context>
chip_gen: v6e
topology: v6e:2x2x1
jax: 0.10.0
libtpu: 0.0.40
codegen_flags: <defaults>
</compile_context>

<pallas_src>
import functools

import jax
import jax.numpy as jnp
from jax import lax
from jax.experimental import pallas as pl
from jax.experimental.pallas import tpu as pltpu

# Small synthetic shapes consistent with the module's __init__ signature.
N = 128              # number of nodes
NUM_FEATURES = 64    # dataset.num_node_features
HIDDEN = 32          # args.hidden
NUM_CLASSES = 16     # dataset.num_classes
K = 10               # args.K
ALPHA = 0.1          # args.alpha
DROPOUT = 0.5        # args.dropout (identity at eval time)


def appnp_net_kernel(xt_ref, w1_ref, b1_ref, w2_ref, b2_ref, at_ref, out_ref,
                     *, k_hops, alpha):
    # --- dropout (eval mode -> identity) ---
    xt = xt_ref[...]                                               # bf16 [F, N]

    # --- x = relu(lin1(x))  ->  h_t = relu(W1 @ x_t + b1) ---
    h = jnp.dot(w1_ref[...], xt,
                preferred_element_type=jnp.float32) + b1_ref[...]  # f32 [H, N]
    h = jnp.maximum(h, 0.0)

    # --- dropout (eval mode -> identity) ---
    # --- x = lin2(x)  ->  z0_t = W2 @ h_t + b2 ---
    z0 = jnp.dot(w2_ref[...], h.astype(w2_ref.dtype),
                 preferred_element_type=jnp.float32) + b2_ref[...]  # f32 [C, N]

    # --- APPNP propagation (transposed):
    #       z_t <- z_t @ [(1-alpha) * A_hat^T] + alpha * z0_t
    #     adjacency is already pre-scaled by (1-alpha) in the wrapper.
    at = at_ref[...]                                               # bf16 [N, N]
    az0 = alpha * z0                                               # f32, hoisted

    def body(_, z):
        # (A_hat @ z)^T == z^T @ A_hat^T; bf16 operands, f32 accumulation.
        return jnp.dot(z.astype(at.dtype), at,
                       preferred_element_type=jnp.float32) + az0

    z = lax.fori_loop(0, k_hops, body, z0, unroll=True)            # f32 [C, N]

    # --- log_softmax along classes (axis 0 in the transposed layout) ---
    m = jnp.max(z, axis=0, keepdims=True)                          # [1, N]
    s = z - m
    lse = jnp.log(jnp.sum(jnp.exp(s), axis=0, keepdims=True))      # [1, N]
    out_ref[...] = s - lse                                         # [C, N]


def prepare_adjacency(a_hat, *, alpha=ALPHA, adj_dtype=jnp.bfloat16,
                      symmetric=True):
    """One-time prep of the propagation operand (cache across forward calls).

    Returns (1 - alpha) * A_hat^T cast to adj_dtype.  For the symmetric
    D^-1/2 (A + I) D^-1/2 normalization the transpose is skipped.
    """
    a = a_hat if symmetric else a_hat.T
    return ((1.0 - alpha) * a.astype(jnp.float32)).astype(adj_dtype)


def appnp_net_forward(x, at_scaled, w1, b1, w2, b2, *, k_hops=K, alpha=ALPHA,
                      lin_dtype=jnp.bfloat16):
    """x: [N,F], at_scaled: [N,N] from prepare_adjacency(), w1: [H,F], b1: [H],
    w2: [C,H], b2: [C].  Returns log-probabilities of shape [N, C]."""
    n, f = x.shape
    h = w1.shape[0]
    c = w2.shape[0]

    # Transposed dataflow: nodes -> lane axis; MXU operands in bf16.
    xt = x.T.astype(lin_dtype)                                 # [F, N]
    w1c = w1.astype(lin_dtype)                                 # [H, F]
    w2c = w2.astype(lin_dtype)                                 # [C, H]
    # Full-lane-width f32 biases (no width-1 masked loads / in-kernel bcast).
    b1b = jnp.broadcast_to(b1.astype(jnp.float32).reshape(h, 1), (h, n))
    b2b = jnp.broadcast_to(b2.astype(jnp.float32).reshape(c, 1), (c, n))

    kernel = functools.partial(appnp_net_kernel, k_hops=k_hops, alpha=float(alpha))

    def im(i):  # single grid step -> always block (0, 0)
        return (0, 0)

    # Cost estimate: two linear layers + K propagation matmuls + softmax.
    lin_itemsize = jnp.dtype(lin_dtype).itemsize
    adj_itemsize = jnp.dtype(at_scaled.dtype).itemsize
    flops = (2 * n * f * h) + (2 * n * h * c) + (2 * k_hops * c * n * n) \
            + (2 * k_hops * c * n) + (5 * c * n)
    transcendentals = c * n + n
    in_bytes = (f * n + h * f + c * h) * lin_itemsize \
               + (h * n + c * n) * 4 + n * n * adj_itemsize
    out_bytes = c * n * 4
    bytes_accessed = in_bytes + out_bytes

    # Generation-aware scoped-VMEM budget (~80% of physical, 64 MiB fallback).
    try:
        vmem_cap = int(getattr(pltpu.get_tpu_info(), "vmem_capacity_bytes",
                               64 * 1024 * 1024))
    except Exception:
        vmem_cap = 64 * 1024 * 1024
    vmem_limit = int(min(int(0.8 * vmem_cap),
                         max(4 * 1024 * 1024, 4 * bytes_accessed)))

    out_t = pl.pallas_call(
        kernel,
        out_shape=jax.ShapeDtypeStruct((c, n), jnp.float32),
        grid=(1,),
        in_specs=[
            pl.BlockSpec((f, n), im),    # x^T                  (bf16)
            pl.BlockSpec((h, f), im),    # W1 [out, in]         (bf16)
            pl.BlockSpec((h, n), im),    # b1 broadcast         (f32)
            pl.BlockSpec((c, h), im),    # W2 [out, in]         (bf16)
            pl.BlockSpec((c, n), im),    # b2 broadcast         (f32)
            pl.BlockSpec((n, n), im),    # (1-alpha)*A_hat^T    (bf16)
        ],
        out_specs=pl.BlockSpec((c, n), im),
        compiler_params=pltpu.CompilerParams(
            dimension_semantics=("arbitrary",),
            vmem_limit_bytes=vmem_limit),
        cost_estimate=pl.CostEstimate(flops=flops,
                                      transcendentals=transcendentals,
                                      bytes_accessed=bytes_accessed),
    )(xt, w1c, b1b, w2c, b2b, at_scaled)

    return out_t.T                              # back to [N, C]


def build_normalized_adj(edge_index, num_nodes):
    """Dense D^-1/2 (A + I) D^-1/2 from an edge_index [2, E] (glue, plain JAX)."""
    src, dst = edge_index[0], edge_index[1]
    a = jnp.zeros((num_nodes, num_nodes), jnp.float32)
    # message flows src -> dst, aggregated at dst: out = A_hat @ x with
    # A_hat[dst, src] = norm
    a = a.at[dst, src].set(1.0)
    a = jnp.minimum(a + jnp.eye(num_nodes, dtype=jnp.float32), 1.0)  # self loops
    deg = jnp.sum(a, axis=1)
    d_inv_sqrt = jnp.where(deg > 0.0, 1.0 / jnp.sqrt(jnp.maximum(deg, 1e-12)), 0.0)
    return a * d_inv_sqrt[:, None] * d_inv_sqrt[None, :]


def _reference(x, a_hat, w1, b1, w2, b2, k_hops=K, alpha=ALPHA):
    h = jnp.maximum(x @ w1.T + b1, 0.0)
    z0 = h @ w2.T + b2
    z = z0
    for _ in range(k_hops):
        z = (1.0 - alpha) * (a_hat @ z) + alpha * z0
    return jax.nn.log_softmax(z, axis=1)


if __name__ == "__main__":
    key = jax.random.PRNGKey(0)
    kx, kw1, kb1, kw2, kb2 = jax.random.split(key, 5)

    # Node features.
    x = jax.random.normal(kx, (N, NUM_FEATURES), jnp.float32)

    # Deterministic ring graph, both directions: edge_index [2, 2N].
    idx = jnp.arange(N)
    src = jnp.concatenate([idx, (idx + 1) % N])
    dst = jnp.concatenate([(idx + 1) % N, idx])
    edge_index = jnp.stack([src, dst]).astype(jnp.int32)
    a_hat = build_normalized_adj(edge_index, N)

    # Deterministic Linear params (PyTorch default U(-1/sqrt(fan_in), 1/sqrt(fan_in))).
    b1_bound = 1.0 / (NUM_FEATURES ** 0.5)
    w1 = jax.random.uniform(kw1, (HIDDEN, NUM_FEATURES), jnp.float32, -b1_bound, b1_bound)
    b1 = jax.random.uniform(kb1, (HIDDEN,), jnp.float32, -b1_bound, b1_bound)
    b2_bound = 1.0 / (HIDDEN ** 0.5)
    w2 = jax.random.uniform(kw2, (NUM_CLASSES, HIDDEN), jnp.float32, -b2_bound, b2_bound)
    b2 = jax.random.uniform(kb2, (NUM_CLASSES,), jnp.float32, -b2_bound, b2_bound)

    # One-time graph prep (symmetric normalization -> no host-side transpose),
    # reusable across forward calls.
    at_scaled = prepare_adjacency(a_hat, alpha=ALPHA, adj_dtype=jnp.bfloat16,
                                  symmetric=True)

    out = appnp_net_forward(x, at_scaled, w1, b1, w2, b2)
    out = jax.block_until_ready(out)

    assert out.shape == (N, NUM_CLASSES)
    ref = _reference(x, a_hat, w1, b1, w2, b2)
    # bf16 MXU operands over K=10 dependent hops -> loosened tolerance vs f32 ref.
    assert jnp.allclose(out, ref, atol=3e-2, rtol=1e-2), "mismatch vs pure-JAX reference"

    print("KERNEL_OK")
</pallas_src>

<mosaic_0001>
module attributes {stable_mosaic.version = 11 : i64} {
  func.func @appnp_net_kernel(%arg0: i32, %arg1: memref<64x128xbf16, #tpu.memory_space<vmem>>, %arg2: memref<32x64xbf16, #tpu.memory_space<vmem>>, %arg3: memref<32x128xf32, #tpu.memory_space<vmem>>, %arg4: memref<16x32xbf16, #tpu.memory_space<vmem>>, %arg5: memref<16x128xf32, #tpu.memory_space<vmem>>, %arg6: memref<128x128xbf16, #tpu.memory_space<vmem>>, %arg7: memref<16x128xf32, #tpu.memory_space<vmem>>) attributes {dimension_semantics = [#tpu.dimension_semantics<arbitrary>], iteration_bounds = array<i64: 1>, scalar_prefetch = 0 : i64, scratch_operands = 0 : i64, tpu.core_type = #tpu.core_type<tc>, window_params = [{pipeline_mode = #tpu.pipeline_mode<synchronous>, transform_indices = @transform_0, window_bounds = array<i64: 64, 128>}, {pipeline_mode = #tpu.pipeline_mode<synchronous>, transform_indices = @transform_1, window_bounds = array<i64: 32, 64>}, {pipeline_mode = #tpu.pipeline_mode<synchronous>, transform_indices = @transform_2, window_bounds = array<i64: 32, 128>}, {pipeline_mode = #tpu.pipeline_mode<synchronous>, transform_indices = @transform_3, window_bounds = array<i64: 16, 32>}, {pipeline_mode = #tpu.pipeline_mode<synchronous>, transform_indices = @transform_4, window_bounds = array<i64: 16, 128>}, {pipeline_mode = #tpu.pipeline_mode<synchronous>, transform_indices = @transform_5, window_bounds = array<i64: 128, 128>}, {pipeline_mode = #tpu.pipeline_mode<synchronous>, transform_indices = @transform_6, window_bounds = array<i64: 16, 128>}]} {
    %c0 = arith.constant 0 : index
    %c0_0 = arith.constant 0 : index
    %0 = vector.load %arg1[%c0, %c0_0] : memref<64x128xbf16, #tpu.memory_space<vmem>>, vector<64x128xbf16>
    %c0_1 = arith.constant 0 : index
    %c0_2 = arith.constant 0 : index
    %1 = vector.load %arg2[%c0_1, %c0_2] : memref<32x64xbf16, #tpu.memory_space<vmem>>, vector<32x64xbf16>
    %cst = arith.constant dense<0.000000e+00> : vector<32x128xf32>
    %2 = tpu.matmul %1, %0, %cst {dimension_numbers = #tpu.dot_dimension_numbers<[1], [0], [0], [1], [0, 0, 1, 1], [], []>} : vector<32x64xbf16>, vector<64x128xbf16>, vector<32x128xf32> -> vector<32x128xf32>
    %c0_3 = arith.constant 0 : index
    %c0_4 = arith.constant 0 : index
    %3 = vector.load %arg3[%c0_3, %c0_4] : memref<32x128xf32, #tpu.memory_space<vmem>>, vector<32x128xf32>
    %4 = arith.addf %2, %3 : vector<32x128xf32>
    %cst_5 = arith.constant 0.000000e+00 : f32
    %5 = vector.broadcast %cst_5 : f32 to vector<32x128xf32>
    %6 = arith.maximumf %4, %5 : vector<32x128xf32>
    %c0_6 = arith.constant 0 : index
    %c0_7 = arith.constant 0 : index
    %7 = vector.load %arg4[%c0_6, %c0_7] : memref<16x32xbf16, #tpu.memory_space<vmem>>, vector<16x32xbf16>
    %8 = arith.truncf %6 : vector<32x128xf32> to vector<32x128xbf16>
    %cst_8 = arith.constant dense<0.000000e+00> : vector<16x128xf32>
    %9 = tpu.matmul %7, %8, %cst_8 {dimension_numbers = #tpu.dot_dimension_numbers<[1], [0], [0], [1], [0, 0, 1, 1], [], []>} : vector<16x32xbf16>, vector<32x128xbf16>, vector<16x128xf32> -> vector<16x128xf32>
    %c0_9 = arith.constant 0 : index
    %c0_10 = arith.constant 0 : index
    %10 = vector.load %arg5[%c0_9, %c0_10] : memref<16x128xf32, #tpu.memory_space<vmem>>, vector<16x128xf32>
    %11 = arith.addf %9, %10 : vector<16x128xf32>
    %c0_11 = arith.constant 0 : index
    %c0_12 = arith.constant 0 : index
    %12 = vector.load %arg6[%c0_11, %c0_12] : memref<128x128xbf16, #tpu.memory_space<vmem>>, vector<128x128xbf16>
    %cst_13 = arith.constant 1.000000e-01 : f32
    %13 = vector.broadcast %cst_13 : f32 to vector<16x128xf32>
    %14 = arith.mulf %13, %11 : vector<16x128xf32>
    %c0_i32 = arith.constant 0 : i32
    %15 = arith.truncf %11 : vector<16x128xf32> to vector<16x128xbf16>
    %cst_14 = arith.constant dense<0.000000e+00> : vector<16x128xf32>
    %16 = tpu.matmul %15, %12, %cst_14 {dimension_numbers = #tpu.dot_dimension_numbers<[1], [0], [0], [1], [0, 0, 1, 1], [], []>} : vector<16x128xbf16>, vector<128x128xbf16>, vector<16x128xf32> -> vector<16x128xf32>
    %17 = arith.addf %16, %14 : vector<16x128xf32>
    %c1_i32 = arith.constant 1 : i32
    %18 = arith.truncf %17 : vector<16x128xf32> to vector<16x128xbf16>
    %cst_15 = arith.constant dense<0.000000e+00> : vector<16x128xf32>
    %19 = tpu.matmul %18, %12, %cst_15 {dimension_numbers = #tpu.dot_dimension_numbers<[1], [0], [0], [1], [0, 0, 1, 1], [], []>} : vector<16x128xbf16>, vector<128x128xbf16>, vector<16x128xf32> -> vector<16x128xf32>
    %20 = arith.addf %19, %14 : vector<16x128xf32>
    %c2_i32 = arith.constant 2 : i32
    %21 = arith.truncf %20 : vector<16x128xf32> to vector<16x128xbf16>
    %cst_16 = arith.constant dense<0.000000e+00> : vector<16x128xf32>
    %22 = tpu.matmul %21, %12, %cst_16 {dimension_numbers = #tpu.dot_dimension_numbers<[1], [0], [0], [1], [0, 0, 1, 1], [], []>} : vector<16x128xbf16>, vector<128x128xbf16>, vector<16x128xf32> -> vector<16x128xf32>
    %23 = arith.addf %22, %14 : vector<16x128xf32>
    %c3_i32 = arith.constant 3 : i32
    %24 = arith.truncf %23 : vector<16x128xf32> to vector<16x128xbf16>
    %cst_17 = arith.constant dense<0.000000e+00> : vector<16x128xf32>
    %25 = tpu.matmul %24, %12, %cst_17 {dimension_numbers = #tpu.dot_dimension_numbers<[1], [0], [0], [1], [0, 0, 1, 1], [], []>} : vector<16x128xbf16>, vector<128x128xbf16>, vector<16x128xf32> -> vector<16x128xf32>
    %26 = arith.addf %25, %14 : vector<16x128xf32>
    %c4_i32 = arith.constant 4 : i32
    %27 = arith.truncf %26 : vector<16x128xf32> to vector<16x128xbf16>
    %cst_18 = arith.constant dense<0.000000e+00> : vector<16x128xf32>
    %28 = tpu.matmul %27, %12, %cst_18 {dimension_numbers = #tpu.dot_dimension_numbers<[1], [0], [0], [1], [0, 0, 1, 1], [], []>} : vector<16x128xbf16>, vector<128x128xbf16>, vector<16x128xf32> -> vector<16x128xf32>
    %29 = arith.addf %28, %14 : vector<16x128xf32>
    %c5_i32 = arith.constant 5 : i32
    %30 = arith.truncf %29 : vector<16x128xf32> to vector<16x128xbf16>
    %cst_19 = arith.constant dense<0.000000e+00> : vector<16x128xf32>
    %31 = tpu.matmul %30, %12, %cst_19 {dimension_numbers = #tpu.dot_dimension_numbers<[1], [0], [0], [1], [0, 0, 1, 1], [], []>} : vector<16x128xbf16>, vector<128x128xbf16>, vector<16x128xf32> -> vector<16x128xf32>
    %32 = arith.addf %31, %14 : vector<16x128xf32>
    %c6_i32 = arith.constant 6 : i32
    %33 = arith.truncf %32 : vector<16x128xf32> to vector<16x128xbf16>
    %cst_20 = arith.constant dense<0.000000e+00> : vector<16x128xf32>
    %34 = tpu.matmul %33, %12, %cst_20 {dimension_numbers = #tpu.dot_dimension_numbers<[1], [0], [0], [1], [0, 0, 1, 1], [], []>} : vector<16x128xbf16>, vector<128x128xbf16>, vector<16x128xf32> -> vector<16x128xf32>
    %35 = arith.addf %34, %14 : vector<16x128xf32>
    %c7_i32 = arith.constant 7 : i32
    %36 = arith.truncf %35 : vector<16x128xf32> to vector<16x128xbf16>
    %cst_21 = arith.constant dense<0.000000e+00> : vector<16x128xf32>
    %37 = tpu.matmul %36, %12, %cst_21 {dimension_numbers = #tpu.dot_dimension_numbers<[1], [0], [0], [1], [0, 0, 1, 1], [], []>} : vector<16x128xbf16>, vector<128x128xbf16>, vector<16x128xf32> -> vector<16x128xf32>
    %38 = arith.addf %37, %14 : vector<16x128xf32>
    %c8_i32 = arith.constant 8 : i32
    %39 = arith.truncf %38 : vector<16x128xf32> to vector<16x128xbf16>
    %cst_22 = arith.constant dense<0.000000e+00> : vector<16x128xf32>
    %40 = tpu.matmul %39, %12, %cst_22 {dimension_numbers = #tpu.dot_dimension_numbers<[1], [0], [0], [1], [0, 0, 1, 1], [], []>} : vector<16x128xbf16>, vector<128x128xbf16>, vector<16x128xf32> -> vector<16x128xf32>
    %41 = arith.addf %40, %14 : vector<16x128xf32>
    %c9_i32 = arith.constant 9 : i32
    %42 = arith.truncf %41 : vector<16x128xf32> to vector<16x128xbf16>
    %cst_23 = arith.constant dense<0.000000e+00> : vector<16x128xf32>
    %43 = tpu.matmul %42, %12, %cst_23 {dimension_numbers = #tpu.dot_dimension_numbers<[1], [0], [0], [1], [0, 0, 1, 1], [], []>} : vector<16x128xbf16>, vector<128x128xbf16>, vector<16x128xf32> -> vector<16x128xf32>
    %44 = arith.addf %43, %14 : vector<16x128xf32>
    %cst_24 = arith.constant dense<0xFF800000> : vector<128xf32>
    %45 = vector.multi_reduction <maximumf>, %44, %cst_24 [0] : vector<16x128xf32> to vector<128xf32>
    %46 = vector.shape_cast %45 : vector<128xf32> to vector<1x128xf32>
    %47 = vector.broadcast %46 : vector<1x128xf32> to vector<16x128xf32>
    %48 = arith.subf %44, %47 : vector<16x128xf32>
    %49 = math.exp %48 : vector<16x128xf32>
    %cst_25 = arith.constant dense<0.000000e+00> : vector<128xf32>
    %50 = vector.multi_reduction <add>, %49, %cst_25 [0] : vector<16x128xf32> to vector<128xf32>
    %51 = vector.shape_cast %50 : vector<128xf32> to vector<1x128xf32>
    %52 = math.log %51 : vector<1x128xf32>
    %53 = vector.broadcast %52 : vector<1x128xf32> to vector<16x128xf32>
    %54 = arith.subf %48, %53 : vector<16x128xf32>
    %c0_26 = arith.constant 0 : index
    %c0_27 = arith.constant 0 : index
    %55 = vector.load %arg7[%c0_26, %c0_27] : memref<16x128xf32, #tpu.memory_space<vmem>>, vector<16x128xf32>
    tpu.vector_store %arg7[%c0_26, %c0_27], %54 {strides = array<i32>} : memref<16x128xf32, #tpu.memory_space<vmem>>, vector<16x128xf32>,
    return
  }
  func.func @transform_0(%arg0: i32) -> (i32, i32) {
    %c0_i32 = arith.constant 0 : i32
    %c0_i32_0 = arith.constant 0 : i32
    %c0_i32_1 = arith.constant 0 : i32
    return %c0_i32, %c0_i32_0 : i32, i32
  }
  func.func @transform_1(%arg0: i32) -> (i32, i32) {
    %c0_i32 = arith.constant 0 : i32
    %c0_i32_0 = arith.constant 0 : i32
    %c0_i32_1 = arith.constant 0 : i32
    return %c0_i32, %c0_i32_0 : i32, i32
  }
  func.func @transform_2(%arg0: i32) -> (i32, i32) {
    %c0_i32 = arith.constant 0 : i32
    %c0_i32_0 = arith.constant 0 : i32
    %c0_i32_1 = arith.constant 0 : i32
    return %c0_i32, %c0_i32_0 : i32, i32
  }
  func.func @transform_3(%arg0: i32) -> (i32, i32) {
    %c0_i32 = arith.constant 0 : i32
    %c0_i32_0 = arith.constant 0 : i32
    %c0_i32_1 = arith.constant 0 : i32
    return %c0_i32, %c0_i32_0 : i32, i32
  }
  func.func @transform_4(%arg0: i32) -> (i32, i32) {
    %c0_i32 = arith.constant 0 : i32
    %c0_i32_0 = arith.constant 0 : i32
    %c0_i32_1 = arith.constant 0 : i32
    return %c0_i32, %c0_i32_0 : i32, i32
  }
  func.func @transform_5(%arg0: i32) -> (i32, i32) {
    %c0_i32 = arith.constant 0 : i32
    %c0_i32_0 = arith.constant 0 : i32
    %c0_i32_1 = arith.constant 0 : i32
    return %c0_i32, %c0_i32_0 : i32, i32
  }
  func.func @transform_6(%arg0: i32) -> (i32, i32) {
    %c0_i32 = arith.constant 0 : i32
    %c0_i32_0 = arith.constant 0 : i32
    %c0_i32_1 = arith.constant 0 : i32
    return %c0_i32, %c0_i32_0 : i32, i32
  }
}

</mosaic_0001>

<bundles_post_ra>
// kernel: tpu_custom_call.1
= control target key start
LH: loop header
LB: loop body
LE: loop exit
PB: predicated region body
PF: predicated region fallthrough
CT: control target
= control target key end

     0   :  { %11 = vsyncpa [#allocation3], 0  ;;  %s1640_s0 = inlined_call_operand.hbm [shape: bf16[64,128], index: 0, kind: input, shape index: {}]   ;;  %s1641_s1 = inlined_call_operand.hbm [shape: bf16[32,64], index: 1, kind: input, shape index: {}]   ;;  %s1642_s2 = inlined_call_operand.hbm [shape: f32[32,128], index: 2, kind: input, shape index: {}]   ;;  %s1643_s3 = inlined_call_operand.hbm [shape: bf16[16,32], index: 3, kind: input, shape index: {}]   ;;  %s1644_s4 = inlined_call_operand.hbm [shape: f32[16,128], index: 4, kind: input, shape index: {}]   ;;  %s1645_s5 = inlined_call_operand.hbm [shape: bf16[128,128], index: 5, kind: input, shape index: {}]   ;;  %s1646_s6 = inlined_call_operand.hbm [shape: f32[16,128], index: 6, kind: output, shape index: {}]  }
   0x1   :  { %12 = vsyncpa [#allocation6], 0 }
   0x2   :  { %13 = vsyncpa [#allocation9], 0 }
   0x3   :  { %14 = vsyncpa [#allocation12], 0 }
   0x4   :  { %15 = vsyncpa [#allocation4], 0  ;;  %s1326_s21 = smov [#allocation5]   ;;  %s1327_s23 = smov [#allocation8]  }
   0x5   :  { %s33_s22 = sshll.u32 %s1326_s21, 4  ;;  %s57_s24 = sshll.u32 %s1327_s23, 4  ;;  %s34_s22 = int_to_ptr.vmem [resolvable:$true] %s33_s22  ;;  %s58_s24 = int_to_ptr.vmem [resolvable:$true] %s57_s24 }
   0x6   :  { %s1184_s25 = scalar_lea.vmem %s34_s22, 256  ;;  %p1189_p1 = scmp.lt.s32.totalorder %s34_s22, %s34_s22 }
   0x7   :  { %p1185_p0 = scmp.ne.s32.totalorder %s34_s22, %s1184_s25  ;;  %p1190_p2 = scmp.lt.s32.totalorder %s1184_s25, %s1184_s25 }
   0x9   :  { %p1191_p3 = por %p1190_p2, %p1189_p1 }
   0xb   :  { %p1192_p4 = pnand %p1191_p3, %p1185_p0 }
   0xd   :  { %1195 = shalt.err (!%p1192_p4)
}
   0xe   :  { %s1328_s26 = smov 64   ;;  %s1329_s27 = smov 4  }
   0xf   :  { %39 = dma.hbm_to_vmem [thread:$0]  %s1641_s1, 256, %s34_s22, [#allocation6], %s1328_s26, %s1328_s26, %s1329_s27  }
  0x10   :  { %s1204_s30 = scalar_lea.vmem %s58_s24, 128  ;;  %p1209_p6 = scmp.lt.s32.totalorder %s58_s24, %s58_s24 }
  0x11   :  { %p1205_p5 = scmp.ne.s32.totalorder %s58_s24, %s1204_s30  ;;  %p1210_p7 = scmp.lt.s32.totalorder %s1204_s30, %s1204_s30 }
  0x13   :  { %p1211_p8 = por %p1210_p7, %p1209_p6 }
  0x15   :  { %p1212_p9 = pnand %p1211_p8, %p1205_p5 }
  0x17   :  { %1215 = shalt.err (!%p1212_p9)
}
  0x18   :  { %63 = dma.hbm_to_vmem [thread:$0]  %s1643_s3, 128, %s58_s24, [#allocation9], %s1328_s26, %s1328_s26, %s1329_s27  }
  0x19   :  { %s1330_s9 = smov [#allocation2]   ;;  %s1331_s11 = smov [#allocation7]  }
  0x1a   :  { %s21_s10 = sshll.u32 %s1330_s9, 4  ;;  %s45_s12 = sshll.u32 %s1331_s11, 4  ;;  %s22_s10 = int_to_ptr.vmem [resolvable:$true] %s21_s10  ;;  %s46_s12 = int_to_ptr.vmem [resolvable:$true] %s45_s12 }
  0x1b   :  { %s1224_s1 = scalar_lea.vmem %s22_s10, 512  ;;  %p1229_p11 = scmp.lt.s32.totalorder %s22_s10, %s22_s10 }
  0x1c   :  { %p1225_p10 = scmp.ne.s32.totalorder %s22_s10, %s1224_s1  ;;  %p1230_p12 = scmp.lt.s32.totalorder %s1224_s1, %s1224_s1 }
  0x1e   :  { %p1231_p13 = por %p1230_p12, %p1229_p11 }
  0x20   :  { %p1232_p0 = pnand %p1231_p13, %p1225_p10 }
  0x22   :  { %1235 = shalt.err (!%p1232_p0)
}
  0x23   :  { %27 = dma.hbm_to_vmem [thread:$0]  %s1640_s0, 512, %s22_s10, [#allocation3], %s1328_s26, %s1328_s26, %s1329_s27  }
  0x24   :  { %s1244_s3 = scalar_lea.vmem %s46_s12, 512  ;;  %p1249_p2 = scmp.lt.s32.totalorder %s46_s12, %s46_s12 }
  0x25   :  { %p1245_p1 = scmp.ne.s32.totalorder %s46_s12, %s1244_s3  ;;  %p1250_p3 = scmp.lt.s32.totalorder %s1244_s3, %s1244_s3 }
  0x27   :  { %p1251_p4 = por %p1250_p3, %p1249_p2 }
  0x29   :  { %p1252_p5 = pnand %p1251_p4, %p1245_p1 }
  0x2b   :  { %1255 = shalt.err (!%p1252_p5)
}
  0x2c   :  { %s1332_s15 = smov 128   ;;  %s1333_s16 = smov 8  }
  0x2d   :  { %51 = dma.hbm_to_vmem [thread:$0]  %s1642_s2, 512, %s46_s12, [#allocation6], %s1332_s15, %s1332_s15, %s1333_s16  }
  0x2e   :  { %s1334_s19 = smov [#allocation10]   ;;  %s1335_s21 = smov [#allocation11]  }
  0x2f   :  { %s69_s20 = sshll.u32 %s1334_s19, 4  ;;  %s81_s0 = sshll.u32 %s1335_s21, 4  ;;  %s70_s20 = int_to_ptr.vmem [resolvable:$true] %s69_s20  ;;  %s82_s0 = int_to_ptr.vmem [resolvable:$true] %s81_s0 }
  0x30   :  { %s1264_s22 = scalar_lea.vmem %s70_s20, 256  ;;  %p1269_p7 = scmp.lt.s32.totalorder %s70_s20, %s70_s20 }
  0x31   :  { %p1265_p6 = scmp.ne.s32.totalorder %s70_s20, %s1264_s22  ;;  %p1270_p8 = scmp.lt.s32.totalorder %s1264_s22, %s1264_s22 }
  0x33   :  { %p1271_p9 = por %p1270_p8, %p1269_p7 }
  0x35   :  { %p1272_p10 = pnand %p1271_p9, %p1265_p6 }
  0x37   :  { %1275 = shalt.err (!%p1272_p10)
}
  0x38   :  { %75 = dma.hbm_to_vmem [thread:$0]  %s1644_s4, 256, %s70_s20, [#allocation9], %s1332_s15, %s1332_s15, %s1333_s16  }
  0x39   :  { %s1284_s2 = scalar_lea.vmem %s82_s0, 1024  ;;  %p1289_p12 = scmp.lt.s32.totalorder %s82_s0, %s82_s0 }
  0x3a   :  { %p1285_p11 = scmp.ne.s32.totalorder %s82_s0, %s1284_s2  ;;  %p1290_p13 = scmp.lt.s32.totalorder %s1284_s2, %s1284_s2 }
  0x3c   :  { %p1291_p0 = por %p1290_p13, %p1289_p12 }
  0x3e   :  { %p1292_p1 = pnand %p1291_p0, %p1285_p11 }
  0x40   :  { %1295 = shalt.err (!%p1292_p1)
}
  0x41   :  { %87 = dma.hbm_to_vmem [thread:$0]  %s1645_s5, 1024, %s82_s0, [#allocation12], %s1328_s26, %s1328_s26, %s1329_s27  }
  0x42   :  { %1316 = dma.done.wait [#allocation3], 512  }
  0x43   :  { %1317 = vsyncadd [#allocation3], 4294966784 }
  0x44   :  { %1318 = dma.done.wait [#allocation6], 768  }
  0x45   :  { %1319 = vsyncadd [#allocation6], 4294966528 }
  0x46   :  { %1320 = dma.done.wait [#allocation9], 384  }
  0x47   :  { %1321 = vsyncadd [#allocation9], 4294966912 }
  0x48   :  { %1322 = dma.done.wait [#allocation12], 1024  }
  0x49   :  { %1323 = vsyncadd [#allocation12], 4294966272  ;;  %v1155_v0 = vld [vmem:[#allocation2 + $0x18] sm:$0xff]   ;;  %v1156_v1 = vld [vmem:[#allocation2 + $0x10] sm:$0xff]   ;;  %vm157_vm0 = vcmask 523264   ;;  %v1336_v6 = vmov 0.0  }
  0x4a   :  { %922 = vmatprep.subr.bf16.mxu0 %v1155_v0  ;;  %v1157_v2 = vld [vmem:[#allocation2 + $0x8] sm:$0xff]   ;;  %v1159_v3 = vld [vmem:[#allocation5] sm:$0xff]   ;;  %934 = vmatprep.subr.bf16.mxu1 %v1336_v6  ;;  %vm1337_vm1 = vmmov 0   ;;  %v1420_v8 = vld [vmem:[#allocation11 + $0x30] sm:$0xff]   ;;  %vm228_vm2 = vcmask 261120   ;;  %s1338_s4 = smov [#allocation13]  }
  0x4b   :  { %923 = vmatpush3.bf16.msra.mxu0 %v1155_v0  ;;  %v1158_v4 = vld [vmem:[#allocation2] sm:$0xff]   ;;  %930 = vmatprep.mubr.msk.bf16.mxu0 %vm157_vm0, %v1159_v3  ;;  %v1160_v5 = vld [vmem:[#allocation5 + $0x8] sm:$0xff]   ;;  %v1424_v9 = vld [vmem:[#allocation11 + $0x28] sm:$0xff]   ;;  %s790_s5 = sshll.u32 %s1338_s4, 4  ;;  %s791_s5 = int_to_ptr.vmem [resolvable:$true] %s790_s5 }
  0x4c   :  { %924 = vmatprep.subr.bf16.mxu0 %v1156_v1  ;;  %938 = vmatprep.mubr.msk.bf16.mxu1 %vm1337_vm1, %v1336_v6  ;;  %v1416_v7 = vld [vmem:[#allocation11 + $0x38] sm:$0xff]   ;;  %v1428_v10 = vld [vmem:[#allocation11 + $0x20] sm:$0xff]   ;;  %v1436_v12 = vld [vmem:[#allocation11 + $0x10] sm:$0xff]   ;;  %s1296_s26 = scalar_lea.vmem %s791_s5, 256  ;;  %p1301_p3 = scmp.lt.s32.totalorder %s791_s5, %s791_s5 }
  0x4d   :  { %v1432_v11 = vld [vmem:[#allocation11 + $0x18] sm:$0xff]   ;;  %v122_v16 = vld [vmem:[#allocation7 + $0x18] sm:$0xff]  ;;  %v119_v18 = vld [vmem:[#allocation7] sm:$0xff]  ;;  %p1297_p2 = scmp.ne.s32.totalorder %s791_s5, %s1296_s26  ;;  %p1302_p4 = scmp.lt.s32.totalorder %s1296_s26, %s1296_s26 }
  0x4e   :  { %v121_v13 = vld [vmem:[#allocation7 + $0x10] sm:$0xff]  ;;  %v120_v20 = vld [vmem:[#allocation7 + $0x8] sm:$0xff]  ;;  %v1161_v31 = vld [vmem:[#allocation8] sm:$0xff]  }
  0x4f   :  { %925 = vmatpush3.bf16.msra.mxu0 %v1156_v1  ;;  %v1456_v32 = vld [vmem:[#allocation11 + $0x8] sm:$0xff]   ;;  %v1462_v33 = vld [vmem:[#allocation11] sm:$0xff]   ;;  %v221_v35 = vld [vmem:[#allocation10] sm:$0xff]  ;;  %p1303_p5 = por %p1302_p4, %p1301_p3 }
  0x50   :  { %926 = vmatprep.subr.bf16.mxu0 %v1157_v2  ;;  %v222_v37 = vld [vmem:[#allocation10 + $0x8] sm:$0xff] }
  0x51   :  { %p1304_p6 = pnand %p1303_p5, %p1297_p2 }
  0x53   :  { %927 = vmatpush3.bf16.msra.mxu0 %v1157_v2 }
  0x54   :  { %928 = vmatprep.subr.bf16.mxu0 %v1158_v4 }
  0x57   :  { %929 = vmatpush3.bf16.msra.mxu0 %v1158_v4 }
  0x58   :  { %962 = vmatprep.subr.bf16.mxu0 %v1336_v6 }
  0x5a   :  { %931 = vmatmul.mubr.msk.bf16.vlgmr.msra.gmra.mxu0 %vm157_vm0, %v1160_v5 }
  0x5b   :  { %978 = vmatprep.mubr.msk.bf16.mxu0 %vm1337_vm1, %v1336_v6  ;;  %963 = vmatpush3.bf16.msra.mxu0 %v1416_v7 }
  0x5c   :  { %964 = vmatprep.subr.bf16.mxu0 %v1336_v6 }
  0x5f   :  { %965 = vmatpush3.bf16.msra.mxu0 %v1420_v8 }
  0x60   :  { %966 = vmatprep.subr.bf16.mxu0 %v1336_v6 }
  0x63   :  { %967 = vmatpush3.bf16.msra.mxu0 %v1424_v9 }
  0x64   :  { %968 = vmatprep.subr.bf16.mxu0 %v1336_v6 }
  0x67   :  { %969 = vmatpush3.bf16.msra.mxu0 %v1428_v10 }
  0x68   :  { %970 = vmatprep.subr.bf16.mxu0 %v1336_v6 }
  0x6b   :  { %971 = vmatpush3.bf16.msra.mxu0 %v1432_v11 }
  0x6c   :  { %972 = vmatprep.subr.bf16.mxu0 %v1336_v6 }
  0x6f   :  { %973 = vmatpush3.bf16.msra.mxu0 %v1436_v12 }
  0x70   :  { %974 = vmatprep.subr.bf16.mxu0 %v1336_v6 }
  0x73   :  { %975 = vmatpush3.bf16.msra.mxu0 %v1456_v32 }
  0x74   :  { %976 = vmatprep.subr.bf16.mxu0 %v1336_v6 }
  0x77   :  { %977 = vmatpush3.bf16.msra.mxu0 %v1462_v33 }
  0x78   :  { %1002 = vmatprep.subr.bf16.mxu0 %v1336_v6 }
 0x11a   :  { %v932_v14 = vpop.f32.mrf.mxu0 }
 0x11b   :  { %v207_v17 = vadd.f32 %v932_v14, %v121_v13 }
 0x11c   :  { %v198_v15 = vpop.f32.mrf.mxu0 }
 0x11d   :  { %v215_v23 = vmax.f32 %v207_v17, 0.0  ;;  %v199_v24 = vadd.f32 %v198_v15, %v119_v18 }
 0x11e   :  { %v933_v19 = vpop.f32.mrf.mxu0 }
 0x11f   :  { %v210_v21 = vadd.f32 %v933_v19, %v122_v16  ;;  %v213_v29 = vmax.f32 %v199_v24, 0.0 }
 0x120   :  { %v201_v22 = vpop.f32.mrf.mxu0 }
 0x121   :  { %v216_v25 = vmax.f32 %v210_v21, 0.0  ;;  %v202_v26 = vadd.f32 %v201_v22, %v120_v20 }
 0x123   :  { %v214_v27 = vmax.f32 %v202_v26, 0.0  ;;  %v220_v28 = vpack.c.bf16 %v216_v25, %v215_v23 }
 0x125   :  { %935 = vmatpush3.bf16.msra.mxu1 %v220_v28  ;;  %v219_v30 = vpack.c.bf16 %v214_v27, %v213_v29 }
 0x126   :  { %936 = vmatprep.subr.bf16.mxu1 %v1336_v6 }
 0x129   :  { %937 = vmatpush3.bf16.msra.mxu1 %v219_v30 }
 0x12a   :  { %942 = vmatprep.subr.bf16.mxu1 %v1336_v6 }
 0x12c   :  { %939 = vmatmul.mubr.msk.bf16.vlgmr.msra.gmra.mxu1 %vm228_vm2, %v1161_v31 }
 0x12d   :  { %943 = vmatpush3.bf16.msra.mxu1 %v1416_v7  ;;  %958 = vmatprep.mubr.msk.bf16.mxu1 %vm1337_vm1, %v1336_v6 }
 0x12e   :  { %944 = vmatprep.subr.bf16.mxu1 %v1336_v6 }
 0x131   :  { %945 = vmatpush3.bf16.msra.mxu1 %v1420_v8 }
 0x132   :  { %946 = vmatprep.subr.bf16.mxu1 %v1336_v6 }
 0x135   :  { %947 = vmatpush3.bf16.msra.mxu1 %v1424_v9 }
 0x136   :  { %948 = vmatprep.subr.bf16.mxu1 %v1336_v6 }
 0x139   :  { %949 = vmatpush3.bf16.msra.mxu1 %v1428_v10 }
 0x13a   :  { %950 = vmatprep.subr.bf16.mxu1 %v1336_v6 }
 0x13d   :  { %951 = vmatpush3.bf16.msra.mxu1 %v1432_v11 }
 0x13e   :  { %952 = vmatprep.subr.bf16.mxu1 %v1336_v6 }
 0x141   :  { %953 = vmatpush3.bf16.msra.mxu1 %v1436_v12 }
 0x142   :  { %954 = vmatprep.subr.bf16.mxu1 %v1336_v6 }
 0x145   :  { %955 = vmatpush3.bf16.msra.mxu1 %v1456_v32 }
 0x146   :  { %956 = vmatprep.subr.bf16.mxu1 %v1336_v6 }
 0x149   :  { %957 = vmatpush3.bf16.msra.mxu1 %v1462_v33 }
 0x14a   :  { %982 = vmatprep.subr.bf16.mxu1 %v1336_v6 }
 0x1ec   :  { %v266_v34 = vpop.f32.mrf.mxu1 }
 0x1ed   :  { %v267_v39 = vadd.f32 %v266_v34, %v221_v35 }
 0x1ee   :  { %v940_v36 = vpop.f32.mrf.mxu1 }
 0x1ef   :  { %v1486_v45 = vmul.f32 0.1, %v267_v39 }
 0x1f0   :  { %v269_v38 = vpop.f32.mrf.mxu1 }
 0x1f1   :  { %v270_v40 = vadd.f32 %v269_v38, %v222_v37 }
 0x1f2   :  { %v941_v41 = vpop.f32.mrf.mxu1 }
 0x1f3   :  { %v291_v42 = vpack.c.bf16 %v270_v40, %v267_v39  ;;  %v1488_v46 = vmul.f32 0.1, %v270_v40 }
 0x1f5   :  { %959 = vmatmul.mubr.bf16.vlgmr.msra.gmra.mxu1 %v291_v42 }
 0x1f6   :  { %983 = vmatpush3.bf16.msra.mxu1 %v1416_v7  ;;  %998 = vmatprep.mubr.msk.bf16.mxu1 %vm1337_vm1, %v1336_v6 }
 0x1f7   :  { %984 = vmatprep.subr.bf16.mxu1 %v1336_v6 }
 0x1fa   :  { %985 = vmatpush3.bf16.msra.mxu1 %v1420_v8 }
 0x1fb   :  { %986 = vmatprep.subr.bf16.mxu1 %v1336_v6 }
 0x1fe   :  { %987 = vmatpush3.bf16.msra.mxu1 %v1424_v9 }
 0x1ff   :  { %988 = vmatprep.subr.bf16.mxu1 %v1336_v6 }
 0x202   :  { %989 = vmatpush3.bf16.msra.mxu1 %v1428_v10 }
 0x203   :  { %990 = vmatprep.subr.bf16.mxu1 %v1336_v6 }
 0x206   :  { %991 = vmatpush3.bf16.msra.mxu1 %v1432_v11 }
 0x207   :  { %992 = vmatprep.subr.bf16.mxu1 %v1336_v6 }
 0x20a   :  { %993 = vmatpush3.bf16.msra.mxu1 %v1436_v12 }
 0x20b   :  { %994 = vmatprep.subr.bf16.mxu1 %v1336_v6 }
 0x20e   :  { %995 = vmatpush3.bf16.msra.mxu1 %v1456_v32 }
 0x20f   :  { %996 = vmatprep.subr.bf16.mxu1 %v1336_v6 }
 0x212   :  { %997 = vmatpush3.bf16.msra.mxu1 %v1462_v33 }
 0x213   :  { %1022 = vmatprep.subr.bf16.mxu1 %v1336_v6 }
 0x2b5   :  { %v374_v43 = vpop.f32.mrf.mxu1 }
 0x2b6   :  { %v375_v48 = vadd.f32 %v374_v43, %v1486_v45 }
 0x2b7   :  { %v960_v44 = vpop.f32.mrf.mxu1 }
 0x2b9   :  { %v377_v47 = vpop.f32.mrf.mxu1 }
 0x2ba   :  { %v378_v49 = vadd.f32 %v377_v47, %v1488_v46 }
 0x2bb   :  { %v961_v50 = vpop.f32.mrf.mxu1 }
 0x2bc   :  { %v381_v51 = vpack.c.bf16 %v378_v49, %v375_v48 }
 0x2be   :  { %979 = vmatmul.mubr.bf16.vlgmr.msra.gmra.mxu0 %v381_v51 }
 0x2bf   :  { %1003 = vmatpush3.bf16.msra.mxu0 %v1416_v7  ;;  %1018 = vmatprep.mubr.msk.bf16.mxu0 %vm1337_vm1, %v1336_v6 }
 0x2c0   :  { %1004 = vmatprep.subr.bf16.mxu0 %v1336_v6 }
 0x2c3   :  { %1005 = vmatpush3.bf16.msra.mxu0 %v1420_v8 }
 0x2c4   :  { %1006 = vmatprep.subr.bf16.mxu0 %v1336_v6 }
 0x2c7   :  { %1007 = vmatpush3.bf16.msra.mxu0 %v1424_v9 }
 0x2c8   :  { %1008 = vmatprep.subr.bf16.mxu0 %v1336_v6 }
 0x2cb   :  { %1009 = vmatpush3.bf16.msra.mxu0 %v1428_v10 }
 0x2cc   :  { %1010 = vmatprep.subr.bf16.mxu0 %v1336_v6 }
 0x2cf   :  { %1011 = vmatpush3.bf16.msra.mxu0 %v1432_v11 }
 0x2d0   :  { %1012 = vmatprep.subr.bf16.mxu0 %v1336_v6 }
 0x2d3   :  { %1013 = vmatpush3.bf16.msra.mxu0 %v1436_v12 }
 0x2d4   :  { %1014 = vmatprep.subr.bf16.mxu0 %v1336_v6 }
 0x2d7   :  { %1015 = vmatpush3.bf16.msra.mxu0 %v1456_v32 }
 0x2d8   :  { %1016 = vmatprep.subr.bf16.mxu0 %v1336_v6 }
 0x2db   :  { %1017 = vmatpush3.bf16.msra.mxu0 %v1462_v33 }
 0x2dc   :  { %1042 = vmatprep.subr.bf16.mxu0 %v1336_v6 }
 0x37e   :  { %v416_v52 = vpop.f32.mrf.mxu0 }
 0x37f   :  { %v417_v55 = vadd.f32 %v416_v52, %v1486_v45 }
 0x380   :  { %v980_v53 = vpop.f32.mrf.mxu0 }
 0x382   :  { %v419_v54 = vpop.f32.mrf.mxu0 }
 0x383   :  { %v420_v56 = vadd.f32 %v419_v54, %v1488_v46 }
 0x384   :  { %v981_v57 = vpop.f32.mrf.mxu0 }
 0x385   :  { %v423_v58 = vpack.c.bf16 %v420_v56, %v417_v55 }
 0x387   :  { %999 = vmatmul.mubr.bf16.vlgmr.msra.gmra.mxu1 %v423_v58 }
 0x388   :  { %1023 = vmatpush3.bf16.msra.mxu1 %v1416_v7  ;;  %1038 = vmatprep.mubr.msk.bf16.mxu1 %vm1337_vm1, %v1336_v6 }
 0x389   :  { %1024 = vmatprep.subr.bf16.mxu1 %v1336_v6 }
 0x38c   :  { %1025 = vmatpush3.bf16.msra.mxu1 %v1420_v8 }
 0x38d   :  { %1026 = vmatprep.subr.bf16.mxu1 %v1336_v6 }
 0x390   :  { %1027 = vmatpush3.bf16.msra.mxu1 %v1424_v9 }
 0x391   :  { %1028 = vmatprep.subr.bf16.mxu1 %v1336_v6 }
 0x394   :  { %1029 = vmatpush3.bf16.msra.mxu1 %v1428_v10 }
 0x395   :  { %1030 = vmatprep.subr.bf16.mxu1 %v1336_v6 }
 0x398   :  { %1031 = vmatpush3.bf16.msra.mxu1 %v1432_v11 }
 0x399   :  { %1032 = vmatprep.subr.bf16.mxu1 %v1336_v6 }
 0x39c   :  { %1033 = vmatpush3.bf16.msra.mxu1 %v1436_v12 }
 0x39d   :  { %1034 = vmatprep.subr.bf16.mxu1 %v1336_v6 }
 0x3a0   :  { %1035 = vmatpush3.bf16.msra.mxu1 %v1456_v32 }
 0x3a1   :  { %1036 = vmatprep.subr.bf16.mxu1 %v1336_v6 }
 0x3a4   :  { %1037 = vmatpush3.bf16.msra.mxu1 %v1462_v33 }
 0x3a5   :  { %1062 = vmatprep.subr.bf16.mxu1 %v1336_v6 }
 0x447   :  { %v458_v59 = vpop.f32.mrf.mxu1 }
 0x448   :  { %v459_v62 = vadd.f32 %v458_v59, %v1486_v45 }
 0x449   :  { %v1000_v60 = vpop.f32.mrf.mxu1 }
 0x44b   :  { %v461_v61 = vpop.f32.mrf.mxu1 }
 0x44c   :  { %v462_v63 = vadd.f32 %v461_v61, %v1488_v46 }
 0x44d   :  { %v1001_v0 = vpop.f32.mrf.mxu1 }
 0x44e   :  { %v465_v1 = vpack.c.bf16 %v462_v63, %v459_v62 }
 0x450   :  { %1019 = vmatmul.mubr.bf16.vlgmr.msra.gmra.mxu0 %v465_v1 }
 0x451   :  { %1043 = vmatpush3.bf16.msra.mxu0 %v1416_v7  ;;  %1058 = vmatprep.mubr.msk.bf16.mxu0 %vm1337_vm1, %v1336_v6 }
 0x452   :  { %1044 = vmatprep.subr.bf16.mxu0 %v1336_v6 }
 0x455   :  { %1045 = vmatpush3.bf16.msra.mxu0 %v1420_v8 }
 0x456   :  { %1046 = vmatprep.subr.bf16.mxu0 %v1336_v6 }
 0x459   :  { %1047 = vmatpush3.bf16.msra.mxu0 %v1424_v9 }
 0x45a   :  { %1048 = vmatprep.subr.bf16.mxu0 %v1336_v6 }
 0x45d   :  { %1049 = vmatpush3.bf16.msra.mxu0 %v1428_v10 }
 0x45e   :  { %1050 = vmatprep.subr.bf16.mxu0 %v1336_v6 }
 0x461   :  { %1051 = vmatpush3.bf16.msra.mxu0 %v1432_v11 }
 0x462   :  { %1052 = vmatprep.subr.bf16.mxu0 %v1336_v6 }
 0x465   :  { %1053 = vmatpush3.bf16.msra.mxu0 %v1436_v12 }
 0x466   :  { %1054 = vmatprep.subr.bf16.mxu0 %v1336_v6 }
 0x469   :  { %1055 = vmatpush3.bf16.msra.mxu0 %v1456_v32 }
 0x46a   :  { %1056 = vmatprep.subr.bf16.mxu0 %v1336_v6 }
 0x46d   :  { %1057 = vmatpush3.bf16.msra.mxu0 %v1462_v33 }
 0x46e   :  { %1082 = vmatprep.subr.bf16.mxu0 %v1336_v6 }
 0x510   :  { %v500_v2 = vpop.f32.mrf.mxu0 }
 0x511   :  { %v501_v5 = vadd.f32 %v500_v2, %v1486_v45 }
 0x512   :  { %v1020_v3 = vpop.f32.mrf.mxu0 }
 0x514   :  { %v503_v4 = vpop.f32.mrf.mxu0 }
 0x515   :  { %v504_v13 = vadd.f32 %v503_v4, %v1488_v46 }
 0x516   :  { %v1021_v14 = vpop.f32.mrf.mxu0 }
 0x517   :  { %v507_v15 = vpack.c.bf16 %v504_v13, %v501_v5 }
 0x519   :  { %1039 = vmatmul.mubr.bf16.vlgmr.msra.gmra.mxu1 %v507_v15 }
 0x51a   :  { %1063 = vmatpush3.bf16.msra.mxu1 %v1416_v7  ;;  %1078 = vmatprep.mubr.msk.bf16.mxu1 %vm1337_vm1, %v1336_v6 }
 0x51b   :  { %1064 = vmatprep.subr.bf16.mxu1 %v1336_v6 }
 0x51e   :  { %1065 = vmatpush3.bf16.msra.mxu1 %v1420_v8 }
 0x51f   :  { %1066 = vmatprep.subr.bf16.mxu1 %v1336_v6 }
 0x522   :  { %1067 = vmatpush3.bf16.msra.mxu1 %v1424_v9 }
 0x523   :  { %1068 = vmatprep.subr.bf16.mxu1 %v1336_v6 }
 0x526   :  { %1069 = vmatpush3.bf16.msra.mxu1 %v1428_v10 }
 0x527   :  { %1070 = vmatprep.subr.bf16.mxu1 %v1336_v6 }
 0x52a   :  { %1071 = vmatpush3.bf16.msra.mxu1 %v1432_v11 }
 0x52b   :  { %1072 = vmatprep.subr.bf16.mxu1 %v1336_v6 }
 0x52e   :  { %1073 = vmatpush3.bf16.msra.mxu1 %v1436_v12 }
 0x52f   :  { %1074 = vmatprep.subr.bf16.mxu1 %v1336_v6 }
 0x532   :  { %1075 = vmatpush3.bf16.msra.mxu1 %v1456_v32 }
 0x533   :  { %1076 = vmatprep.subr.bf16.mxu1 %v1336_v6 }
 0x536   :  { %1077 = vmatpush3.bf16.msra.mxu1 %v1462_v33 }
 0x537   :  { %1102 = vmatprep.subr.bf16.mxu1 %v1336_v6 }
 0x5d9   :  { %v542_v16 = vpop.f32.mrf.mxu1 }
 0x5da   :  { %v543_v19 = vadd.f32 %v542_v16, %v1486_v45 }
 0x5db   :  { %v1040_v17 = vpop.f32.mrf.mxu1 }
 0x5dd   :  { %v545_v18 = vpop.f32.mrf.mxu1 }
 0x5de   :  { %v546_v20 = vadd.f32 %v545_v18, %v1488_v46 }
 0x5df   :  { %v1041_v21 = vpop.f32.mrf.mxu1 }
 0x5e0   :  { %v549_v22 = vpack.c.bf16 %v546_v20, %v543_v19 }
 0x5e2   :  { %1059 = vmatmul.mubr.bf16.vlgmr.msra.gmra.mxu0 %v549_v22 }
 0x5e3   :  { %1083 = vmatpush3.bf16.msra.mxu0 %v1416_v7  ;;  %1098 = vmatprep.mubr.msk.bf16.mxu0 %vm1337_vm1, %v1336_v6 }
 0x5e4   :  { %1084 = vmatprep.subr.bf16.mxu0 %v1336_v6 }
 0x5e7   :  { %1085 = vmatpush3.bf16.msra.mxu0 %v1420_v8 }
 0x5e8   :  { %1086 = vmatprep.subr.bf16.mxu0 %v1336_v6 }
 0x5eb   :  { %1087 = vmatpush3.bf16.msra.mxu0 %v1424_v9 }
 0x5ec   :  { %1088 = vmatprep.subr.bf16.mxu0 %v1336_v6 }
 0x5ef   :  { %1089 = vmatpush3.bf16.msra.mxu0 %v1428_v10 }
 0x5f0   :  { %1090 = vmatprep.subr.bf16.mxu0 %v1336_v6 }
 0x5f3   :  { %1091 = vmatpush3.bf16.msra.mxu0 %v1432_v11 }
 0x5f4   :  { %1092 = vmatprep.subr.bf16.mxu0 %v1336_v6 }
 0x5f7   :  { %1093 = vmatpush3.bf16.msra.mxu0 %v1436_v12 }
 0x5f8   :  { %1094 = vmatprep.subr.bf16.mxu0 %v1336_v6 }
 0x5fb   :  { %1095 = vmatpush3.bf16.msra.mxu0 %v1456_v32 }
 0x5fc   :  { %1096 = vmatprep.subr.bf16.mxu0 %v1336_v6 }
 0x5ff   :  { %1097 = vmatpush3.bf16.msra.mxu0 %v1462_v33 }
 0x600   :  { %1122 = vmatprep.subr.bf16.mxu0 %v1336_v6 }
 0x6a2   :  { %v584_v23 = vpop.f32.mrf.mxu0 }
 0x6a3   :  { %v585_v26 = vadd.f32 %v584_v23, %v1486_v45 }
 0x6a4   :  { %v1060_v24 = vpop.f32.mrf.mxu0 }
 0x6a6   :  { %v587_v25 = vpop.f32.mrf.mxu0 }
 0x6a7   :  { %v588_v27 = vadd.f32 %v587_v25, %v1488_v46 }
 0x6a8   :  { %v1061_v28 = vpop.f32.mrf.mxu0 }
 0x6a9   :  { %v591_v29 = vpack.c.bf16 %v588_v27, %v585_v26 }
 0x6ab   :  { %1079 = vmatmul.mubr.bf16.vlgmr.msra.gmra.mxu1 %v591_v29 }
 0x6ac   :  { %1103 = vmatpush3.bf16.msra.mxu1 %v1416_v7  ;;  %1118 = vmatprep.mubr.msk.bf16.mxu1 %vm1337_vm1, %v1336_v6 }
 0x6ad   :  { %1104 = vmatprep.subr.bf16.mxu1 %v1336_v6 }
 0x6b0   :  { %1105 = vmatpush3.bf16.msra.mxu1 %v1420_v8 }
 0x6b1   :  { %1106 = vmatprep.subr.bf16.mxu1 %v1336_v6 }
 0x6b4   :  { %1107 = vmatpush3.bf16.msra.mxu1 %v1424_v9 }
 0x6b5   :  { %1108 = vmatprep.subr.bf16.mxu1 %v1336_v6 }
 0x6b8   :  { %1109 = vmatpush3.bf16.msra.mxu1 %v1428_v10 }
 0x6b9   :  { %1110 = vmatprep.subr.bf16.mxu1 %v1336_v6 }
 0x6bc   :  { %1111 = vmatpush3.bf16.msra.mxu1 %v1432_v11 }
 0x6bd   :  { %1112 = vmatprep.subr.bf16.mxu1 %v1336_v6 }
 0x6c0   :  { %1113 = vmatpush3.bf16.msra.mxu1 %v1436_v12 }
 0x6c1   :  { %1114 = vmatprep.subr.bf16.mxu1 %v1336_v6 }
 0x6c4   :  { %1115 = vmatpush3.bf16.msra.mxu1 %v1456_v32 }
 0x6c5   :  { %1116 = vmatprep.subr.bf16.mxu1 %v1336_v6 }
 0x6c8   :  { %1117 = vmatpush3.bf16.msra.mxu1 %v1462_v33 }
 0x76b   :  { %v626_v30 = vpop.f32.mrf.mxu1 }
 0x76c   :  { %v627_v35 = vadd.f32 %v626_v30, %v1486_v45 }
 0x76d   :  { %v1080_v31 = vpop.f32.mrf.mxu1 }
 0x76f   :  { %v629_v34 = vpop.f32.mrf.mxu1 }
 0x770   :  { %v630_v36 = vadd.f32 %v629_v34, %v1488_v46 }
 0x771   :  { %v1081_v37 = vpop.f32.mrf.mxu1 }
 0x772   :  { %v633_v38 = vpack.c.bf16 %v630_v36, %v627_v35 }
 0x774   :  { %1099 = vmatmul.mubr.bf16.vlgmr.msra.gmra.mxu0 %v633_v38 }
 0x775   :  { %1123 = vmatpush3.bf16.msra.mxu0 %v1416_v7  ;;  %1138 = vmatprep.mubr.msk.bf16.mxu0 %vm1337_vm1, %v1336_v6 }
 0x776   :  { %1124 = vmatprep.subr.bf16.mxu0 %v1336_v6 }
 0x779   :  { %1125 = vmatpush3.bf16.msra.mxu0 %v1420_v8 }
 0x77a   :  { %1126 = vmatprep.subr.bf16.mxu0 %v1336_v6 }
 0x77d   :  { %1127 = vmatpush3.bf16.msra.mxu0 %v1424_v9 }
 0x77e   :  { %1128 = vmatprep.subr.bf16.mxu0 %v1336_v6 }
 0x781   :  { %1129 = vmatpush3.bf16.msra.mxu0 %v1428_v10 }
 0x782   :  { %1130 = vmatprep.subr.bf16.mxu0 %v1336_v6 }
 0x785   :  { %1131 = vmatpush3.bf16.msra.mxu0 %v1432_v11 }
 0x786   :  { %1132 = vmatprep.subr.bf16.mxu0 %v1336_v6 }
 0x789   :  { %1133 = vmatpush3.bf16.msra.mxu0 %v1436_v12 }
 0x78a   :  { %1134 = vmatprep.subr.bf16.mxu0 %v1336_v6 }
 0x78d   :  { %1135 = vmatpush3.bf16.msra.mxu0 %v1456_v32 }
 0x78e   :  { %1136 = vmatprep.subr.bf16.mxu0 %v1336_v6 }
 0x791   :  { %1137 = vmatpush3.bf16.msra.mxu0 %v1462_v33 }
 0x834   :  { %v668_v7 = vpop.f32.mrf.mxu0 }
 0x835   :  { %v669_v10 = vadd.f32 %v668_v7, %v1486_v45 }
 0x836   :  { %v1100_v8 = vpop.f32.mrf.mxu0 }
 0x838   :  { %v671_v9 = vpop.f32.mrf.mxu0 }
 0x839   :  { %v672_v39 = vadd.f32 %v671_v9, %v1488_v46 }
 0x83a   :  { %v1101_v11 = vpop.f32.mrf.mxu0 }
 0x83b   :  { %v675_v40 = vpack.c.bf16 %v672_v39, %v669_v10 }
 0x83d   :  { %1119 = vmatmul.mubr.bf16.vlgmr.msra.gmra.mxu1 %v675_v40 }
 0x8fd   :  { %v710_v41 = vpop.f32.mrf.mxu1 }
 0x8fe   :  { %v711_v43 = vadd.f32 %v710_v41, %v1486_v45 }
 0x8ff   :  { %v1120_v12 = vpop.f32.mrf.mxu1 }
 0x901   :  { %v713_v42 = vpop.f32.mrf.mxu1 }
 0x902   :  { %v714_v32 = vadd.f32 %v713_v42, %v1488_v46 }
 0x903   :  { %v1121_v6 = vpop.f32.mrf.mxu1 }
 0x904   :  { %v717_v44 = vpack.c.bf16 %v714_v32, %v711_v43 }
 0x906   :  { %1139 = vmatmul.mubr.bf16.vlgmr.msra.gmra.mxu0 %v717_v44 }
 0x9c6   :  { %v752_v33 = vpop.f32.mrf.mxu0 }
 0x9c7   :  { %v753_v49 = vadd.f32 %v752_v33, %v1486_v45 }
 0x9c8   :  { %v1140_v47 = vpop.f32.mrf.mxu0 }
 0x9ca   :  { %v755_v48 = vpop.f32.mrf.mxu0 }
 0x9cb   :  { %v756_v50 = vadd.f32 %v755_v48, %v1488_v46 }
 0x9cc   :  { %v1141_v51 = vpop.f32.mrf.mxu0 }
 0x9cd   :  { %v759_v52 = vmax.f32 %v753_v49, %v756_v50 }
 0x9cf   :  { %v760_v53 = vrot.slane %v759_v52, 4 }
 0x9d1   :  { %v761_v54 = vmax.f32 %v759_v52, %v760_v53 }
 0x9d3   :  { %v762_v55 = vrot.slane %v761_v54, 2 }
 0x9d5   :  { %v763_v56 = vmax.f32 %v761_v54, %v762_v55 }
 0x9d7   :  { %v764_v57 = vrot.slane %v763_v56, 1 }
 0x9d9   :  { %v765_v58 = vmax.f32 %v763_v56, %v764_v57 }
 0x9db   :  { %v766_v59 = vsub.f32 %v753_v49, %v765_v58  ;;  %v767_v60 = vsub.f32 %v756_v50, %v765_v58 }
 0x9dd   :  { %v768_v61 = vmul.f32 1.442695, %v766_v59  ;;  %v770_v62 = vmul.f32 1.442695, %v767_v60 }
 0x9df   :  { %1170 = vpow2.f32 %v768_v61 }
 0x9e0   :  { %1172 = vpow2.f32 %v770_v62 }
 0x9ec   :  { %v1171_v63 = vpop.eup %1170 }
 0x9ed   :  { %v1173_v0 = vpop.eup %1172 }
 0x9ee   :  { %v772_v1 = vadd.f32 %v1173_v0, %v1171_v63 }
 0x9f0   :  { %v773_v45 = vrot.slane %v772_v1, 4 }
 0x9f2   :  { %v774_v2 = vadd.f32 %v773_v45, %v772_v1 }
 0x9f4   :  { %v775_v46 = vrot.slane %v774_v2, 2 }
 0x9f6   :  { %v776_v3 = vadd.f32 %v775_v46, %v774_v2 }
 0x9f8   :  { %v777_v4 = vrot.slane %v776_v3, 1 }
 0x9fa   :  { %v778_v5 = vadd.f32 %v777_v4, %v776_v3 }
 0x9fc   :  { %1174 = vlog2.f32 %v778_v5 }
 0xa09   :  { %v1175_v13 = vpop.eup %1174 }
 0xa0a   :  { %v780_v14 = vmul.f32 0.6931472, %v1175_v13 }
 0xa0c   :  { %v782_v15 = vsub.f32 %v767_v60, %v780_v14  ;;  %v781_v16 = vsub.f32 %v766_v59, %v780_v14 }
 0xa0e   :  { %784 = vst [vmem:[#allocation13 + $0x8] sm:$0xff] %v782_v15  ;;  %783 = vst [vmem:[#allocation13] sm:$0xff] %v781_v16 }
 0xa0f   :  { %1307 = shalt.err (!%p1304_p6)
}
 0xa10   :  { %796 = dma.vmem_to_hbm [thread:$0]  %s791_s5, 256, %s1646_s6, [#allocation4], %s1332_s15, %s1332_s15, %s1333_s16  }
 0xa11   :  { %1324 = dma.done.wait [#allocation4], 256  }
 0xa12   :  { %1325 = vsyncadd [#allocation4], 4294967040 }
 0xa13   :  { %800 = vsyncpa [#allocation3], 1 }
 0xa14   :  { %801 = vsyncpa [#allocation6], 1 }
 0xa15   :  { %802 = vsyncpa [#allocation9], 1 }
 0xa16   :  { %803 = vsyncpa [#allocation12], 1 }
 0xa17   :  { %804 = vsyncpa [#allocation4], 1 }

</bundles_post_ra>
